<compile_context>
chip_gen: v5e
topology: v5e:2x2
jax: 0.10.0
libtpu: 0.0.40
codegen_flags: <defaults>
</compile_context>

<pallas_src>
import jax
import jax.numpy as jnp
from jax.experimental import pallas as pl
from jax.experimental.pallas import tpu as pltpu

NET_CONFIG = [30, 60, 30]
BN_EPS = 1e-5
PAD = 128  # lane-dense padded feature width


def _mlp_kernel(x_ref, w_ref, v_ref, o_ref):
    # x_ref: (B, 128) padded activations
    # w_ref: (4, 128, 128) pre-transposed, zero-padded weights (x @ W layout)
    # v_ref: (4, 3, 128) packed [bias, gamma, beta] per layer (layer 3: bias only)
    h = x_ref[...]  # (B, 128)

    for layer in range(4):
        v = v_ref[layer]                      # (3, 128) -- single load per layer
        b = v[0:1, :]                         # (1, 128)
        h = jnp.dot(h, w_ref[layer],
                    preferred_element_type=jnp.float32) + b
        if layer < 3:
            h = jnp.maximum(h, 0.0)           # ReLU
            g = v[1:2, :]                     # gamma (1, 128)
            be = v[2:3, :]                    # beta  (1, 128)
            # Training-mode BatchNorm1d: biased batch stats over axis 0.
            mean = jnp.mean(h, axis=0, keepdims=True)          # (1, 128)
            c = h - mean                                       # reuse centered
            var = jnp.mean(c * c, axis=0, keepdims=True)       # (1, 128)
            scale = g * jax.lax.rsqrt(var + BN_EPS)            # (1, 128)
            h = c * scale + be                                 # 1 mul + 1 add

    o_ref[...] = h  # lane-dense (B, 128) store


def _pack_params(params, in_features, out_features):
    """Pre-transpose + zero-pad weights into (4,128,128); pack bias/gamma/beta
    into (4,3,128).  Runs once on the host/XLA side."""
    (w1, b1, g1, be1,
     w2, b2, g2, be2,
     w3, b3, g3, be3,
     w4, b4) = params

    dims = [in_features] + NET_CONFIG + [out_features]
    assert max(dims) <= PAD, "feature dims must fit in one 128-lane tile"

    ws = [w1, w2, w3, w4]
    zeros_out = jnp.zeros((out_features,), jnp.float32)
    vecs = [(b1, g1, be1), (b2, g2, be2), (b3, g3, be3),
            (b4, zeros_out, zeros_out)]

    W = jnp.zeros((4, PAD, PAD), jnp.float32)
    V = jnp.zeros((4, 3, PAD), jnp.float32)
    for i in range(4):
        fan_in, fan_out = dims[i], dims[i + 1]
        wt = ws[i].astype(jnp.float32).T            # (in, out) -> x @ W
        W = W.at[i, :fan_in, :fan_out].set(wt)
        b, g, be = vecs[i]
        V = V.at[i, 0, :fan_out].set(b.astype(jnp.float32))
        V = V.at[i, 1, :fan_out].set(g.astype(jnp.float32))
        V = V.at[i, 2, :fan_out].set(be.astype(jnp.float32))
    return W, V


def net_forward(x, params):
    """x: any shape whose trailing dims flatten to input_features
    (mirrors `x.view(-1, input_features)`)."""
    in_features = params[0].shape[1]
    out_features = params[-2].shape[0]

    x2d = x.reshape(-1, in_features).astype(jnp.float32)
    batch = x2d.shape[0]

    # Lane-dense padded input (pad lanes are exactly zero -> stay zero everywhere).
    x_pad = jnp.zeros((batch, PAD), jnp.float32).at[:, :in_features].set(x2d)
    W, V = _pack_params(params, in_features, out_features)

    out_pad = pl.pallas_call(
        _mlp_kernel,
        out_shape=jax.ShapeDtypeStruct((batch, PAD), jnp.float32),
        in_specs=[pl.BlockSpec(memory_space=pltpu.MemorySpace.VMEM)] * 3,
        out_specs=pl.BlockSpec(memory_space=pltpu.MemorySpace.VMEM),
    )(x_pad, W, V)

    return out_pad[:, :out_features]


def _reference_forward(x, params):
    """Pure-JAX reference (PyTorch training-mode semantics) for validation."""
    (w1, b1, g1, be1,
     w2, b2, g2, be2,
     w3, b3, g3, be3,
     w4, b4) = params
    h = x.reshape(-1, w1.shape[1]).astype(jnp.float32)

    def bn(h, g, be):
        mean = jnp.mean(h, axis=0, keepdims=True)
        var = jnp.mean((h - mean) ** 2, axis=0, keepdims=True)
        return (h - mean) * jax.lax.rsqrt(var + BN_EPS) * g + be

    h = bn(jnp.maximum(h @ w1.T + b1, 0.0), g1, be1)
    h = bn(jnp.maximum(h @ w2.T + b2, 0.0), g2, be2)
    h = bn(jnp.maximum(h @ w3.T + b3, 0.0), g3, be3)
    return h @ w4.T + b4


def init_params(key, input_features, output_features):
    """Deterministic synthetic parameters matching the PyTorch module shapes."""
    dims = [input_features] + NET_CONFIG + [output_features]
    params = []
    for i in range(4):
        fan_in, fan_out = dims[i], dims[i + 1]
        key, kw, kb = jax.random.split(key, 3)
        bound = 1.0 / jnp.sqrt(fan_in)
        w = jax.random.uniform(kw, (fan_out, fan_in), jnp.float32, -bound, bound)
        b = jax.random.uniform(kb, (fan_out,), jnp.float32, -bound, bound)
        params.extend([w, b])
        if i < 3:  # BatchNorm1d after first three layers (default init: gamma=1, beta=0)
            params.extend([jnp.ones((fan_out,), jnp.float32),
                           jnp.zeros((fan_out,), jnp.float32)])
    return tuple(params)


if __name__ == "__main__":
    input_features = 16
    output_features = 8
    batch = 8

    key = jax.random.PRNGKey(0)
    key, kx = jax.random.split(key)
    x = jax.random.normal(kx, (batch, input_features), jnp.float32)

    params = init_params(key, input_features, output_features)

    out = net_forward(x, params)
    out = jax.block_until_ready(out)
    assert out.shape == (batch, output_features), out.shape

    ref = jax.block_until_ready(_reference_forward(x, params))
    max_err = float(jnp.max(jnp.abs(out - ref)))
    assert max_err < 1e-3, f"mismatch vs reference: {max_err}"

    print("KERNEL_OK")
</pallas_src>

<mosaic_0001>
module attributes {stable_mosaic.version = 11 : i64} {
  func.func @_mlp_kernel(%arg0: memref<8x128xf32, #tpu.memory_space<vmem>>, %arg1: memref<4x128x128xf32, #tpu.memory_space<vmem>>, %arg2: memref<4x3x128xf32, #tpu.memory_space<vmem>>, %arg3: memref<8x128xf32, #tpu.memory_space<vmem>>) attributes {dimension_semantics = [], scalar_prefetch = 0 : i64, scratch_operands = 0 : i64, tpu.core_type = #tpu.core_type<tc>} {
    %c0 = arith.constant 0 : index
    %c0_0 = arith.constant 0 : index
    %0 = vector.load %arg0[%c0, %c0_0] : memref<8x128xf32, #tpu.memory_space<vmem>>, vector<8x128xf32>
    %c0_1 = arith.constant 0 : index
    %c0_2 = arith.constant 0 : index
    %c0_3 = arith.constant 0 : index
    %1 = vector.load %arg2[%c0_1, %c0_2, %c0_3] : memref<4x3x128xf32, #tpu.memory_space<vmem>>, vector<1x3x128xf32>
    %2 = vector.shape_cast %1 : vector<1x3x128xf32> to vector<3x128xf32>
    %3 = vector.extract_strided_slice %2 {offsets = [0, 0], sizes = [1, 128], strides = [1, 1]} : vector<3x128xf32> to vector<1x128xf32>
    %c0_4 = arith.constant 0 : index
    %c0_5 = arith.constant 0 : index
    %c0_6 = arith.constant 0 : index
    %4 = vector.load %arg1[%c0_4, %c0_5, %c0_6] : memref<4x128x128xf32, #tpu.memory_space<vmem>>, vector<1x128x128xf32>
    %5 = vector.shape_cast %4 : vector<1x128x128xf32> to vector<128x128xf32>
    %cst = arith.constant dense<0.000000e+00> : vector<8x128xf32>
    %6 = tpu.matmul %0, %5, %cst {dimension_numbers = #tpu.dot_dimension_numbers<[1], [0], [0], [1], [0, 0, 1, 1], [], []>} : vector<8x128xf32>, vector<128x128xf32>, vector<8x128xf32> -> vector<8x128xf32>
    %7 = vector.broadcast %3 : vector<1x128xf32> to vector<8x128xf32>
    %8 = arith.addf %6, %7 : vector<8x128xf32>
    %cst_7 = arith.constant 0.000000e+00 : f32
    %9 = vector.broadcast %cst_7 : f32 to vector<8x128xf32>
    %10 = arith.maximumf %8, %9 : vector<8x128xf32>
    %11 = vector.extract_strided_slice %2 {offsets = [1, 0], sizes = [1, 128], strides = [1, 1]} : vector<3x128xf32> to vector<1x128xf32>
    %12 = vector.extract_strided_slice %2 {offsets = [2, 0], sizes = [1, 128], strides = [1, 1]} : vector<3x128xf32> to vector<1x128xf32>
    %cst_8 = arith.constant dense<0.000000e+00> : vector<128xf32>
    %13 = vector.multi_reduction <add>, %10, %cst_8 [0] : vector<8x128xf32> to vector<128xf32>
    %14 = vector.shape_cast %13 : vector<128xf32> to vector<1x128xf32>
    %cst_9 = arith.constant 8.000000e+00 : f32
    %15 = vector.broadcast %cst_9 : f32 to vector<1x128xf32>
    %16 = arith.divf %14, %15 : vector<1x128xf32>
    %17 = vector.broadcast %16 : vector<1x128xf32> to vector<8x128xf32>
    %18 = arith.subf %10, %17 : vector<8x128xf32>
    %19 = arith.mulf %18, %18 : vector<8x128xf32>
    %cst_10 = arith.constant dense<0.000000e+00> : vector<128xf32>
    %20 = vector.multi_reduction <add>, %19, %cst_10 [0] : vector<8x128xf32> to vector<128xf32>
    %21 = vector.shape_cast %20 : vector<128xf32> to vector<1x128xf32>
    %cst_11 = arith.constant 8.000000e+00 : f32
    %22 = vector.broadcast %cst_11 : f32 to vector<1x128xf32>
    %23 = arith.divf %21, %22 : vector<1x128xf32>
    %cst_12 = arith.constant 9.99999974E-6 : f32
    %24 = vector.broadcast %cst_12 : f32 to vector<1x128xf32>
    %25 = arith.addf %23, %24 : vector<1x128xf32>
    %26 = math.rsqrt %25 : vector<1x128xf32>
    %27 = arith.mulf %11, %26 : vector<1x128xf32>
    %28 = vector.broadcast %27 : vector<1x128xf32> to vector<8x128xf32>
    %29 = arith.mulf %18, %28 : vector<8x128xf32>
    %30 = vector.broadcast %12 : vector<1x128xf32> to vector<8x128xf32>
    %31 = arith.addf %29, %30 : vector<8x128xf32>
    %c1 = arith.constant 1 : index
    %c0_13 = arith.constant 0 : index
    %c0_14 = arith.constant 0 : index
    %32 = vector.load %arg2[%c1, %c0_13, %c0_14] : memref<4x3x128xf32, #tpu.memory_space<vmem>>, vector<1x3x128xf32>
    %33 = vector.shape_cast %32 : vector<1x3x128xf32> to vector<3x128xf32>
    %34 = vector.extract_strided_slice %33 {offsets = [0, 0], sizes = [1, 128], strides = [1, 1]} : vector<3x128xf32> to vector<1x128xf32>
    %c1_15 = arith.constant 1 : index
    %c0_16 = arith.constant 0 : index
    %c0_17 = arith.constant 0 : index
    %35 = vector.load %arg1[%c1_15, %c0_16, %c0_17] : memref<4x128x128xf32, #tpu.memory_space<vmem>>, vector<1x128x128xf32>
    %36 = vector.shape_cast %35 : vector<1x128x128xf32> to vector<128x128xf32>
    %cst_18 = arith.constant dense<0.000000e+00> : vector<8x128xf32>
    %37 = tpu.matmul %31, %36, %cst_18 {dimension_numbers = #tpu.dot_dimension_numbers<[1], [0], [0], [1], [0, 0, 1, 1], [], []>} : vector<8x128xf32>, vector<128x128xf32>, vector<8x128xf32> -> vector<8x128xf32>
    %38 = vector.broadcast %34 : vector<1x128xf32> to vector<8x128xf32>
    %39 = arith.addf %37, %38 : vector<8x128xf32>
    %cst_19 = arith.constant 0.000000e+00 : f32
    %40 = vector.broadcast %cst_19 : f32 to vector<8x128xf32>
    %41 = arith.maximumf %39, %40 : vector<8x128xf32>
    %42 = vector.extract_strided_slice %33 {offsets = [1, 0], sizes = [1, 128], strides = [1, 1]} : vector<3x128xf32> to vector<1x128xf32>
    %43 = vector.extract_strided_slice %33 {offsets = [2, 0], sizes = [1, 128], strides = [1, 1]} : vector<3x128xf32> to vector<1x128xf32>
    %cst_20 = arith.constant dense<0.000000e+00> : vector<128xf32>
    %44 = vector.multi_reduction <add>, %41, %cst_20 [0] : vector<8x128xf32> to vector<128xf32>
    %45 = vector.shape_cast %44 : vector<128xf32> to vector<1x128xf32>
    %cst_21 = arith.constant 8.000000e+00 : f32
    %46 = vector.broadcast %cst_21 : f32 to vector<1x128xf32>
    %47 = arith.divf %45, %46 : vector<1x128xf32>
    %48 = vector.broadcast %47 : vector<1x128xf32> to vector<8x128xf32>
    %49 = arith.subf %41, %48 : vector<8x128xf32>
    %50 = arith.mulf %49, %49 : vector<8x128xf32>
    %cst_22 = arith.constant dense<0.000000e+00> : vector<128xf32>
    %51 = vector.multi_reduction <add>, %50, %cst_22 [0] : vector<8x128xf32> to vector<128xf32>
    %52 = vector.shape_cast %51 : vector<128xf32> to vector<1x128xf32>
    %cst_23 = arith.constant 8.000000e+00 : f32
    %53 = vector.broadcast %cst_23 : f32 to vector<1x128xf32>
    %54 = arith.divf %52, %53 : vector<1x128xf32>
    %cst_24 = arith.constant 9.99999974E-6 : f32
    %55 = vector.broadcast %cst_24 : f32 to vector<1x128xf32>
    %56 = arith.addf %54, %55 : vector<1x128xf32>
    %57 = math.rsqrt %56 : vector<1x128xf32>
    %58 = arith.mulf %42, %57 : vector<1x128xf32>
    %59 = vector.broadcast %58 : vector<1x128xf32> to vector<8x128xf32>
    %60 = arith.mulf %49, %59 : vector<8x128xf32>
    %61 = vector.broadcast %43 : vector<1x128xf32> to vector<8x128xf32>
    %62 = arith.addf %60, %61 : vector<8x128xf32>
    %c2 = arith.constant 2 : index
    %c0_25 = arith.constant 0 : index
    %c0_26 = arith.constant 0 : index
    %63 = vector.load %arg2[%c2, %c0_25, %c0_26] : memref<4x3x128xf32, #tpu.memory_space<vmem>>, vector<1x3x128xf32>
    %64 = vector.shape_cast %63 : vector<1x3x128xf32> to vector<3x128xf32>
    %65 = vector.extract_strided_slice %64 {offsets = [0, 0], sizes = [1, 128], strides = [1, 1]} : vector<3x128xf32> to vector<1x128xf32>
    %c2_27 = arith.constant 2 : index
    %c0_28 = arith.constant 0 : index
    %c0_29 = arith.constant 0 : index
    %66 = vector.load %arg1[%c2_27, %c0_28, %c0_29] : memref<4x128x128xf32, #tpu.memory_space<vmem>>, vector<1x128x128xf32>
    %67 = vector.shape_cast %66 : vector<1x128x128xf32> to vector<128x128xf32>
    %cst_30 = arith.constant dense<0.000000e+00> : vector<8x128xf32>
    %68 = tpu.matmul %62, %67, %cst_30 {dimension_numbers = #tpu.dot_dimension_numbers<[1], [0], [0], [1], [0, 0, 1, 1], [], []>} : vector<8x128xf32>, vector<128x128xf32>, vector<8x128xf32> -> vector<8x128xf32>
    %69 = vector.broadcast %65 : vector<1x128xf32> to vector<8x128xf32>
    %70 = arith.addf %68, %69 : vector<8x128xf32>
    %cst_31 = arith.constant 0.000000e+00 : f32
    %71 = vector.broadcast %cst_31 : f32 to vector<8x128xf32>
    %72 = arith.maximumf %70, %71 : vector<8x128xf32>
    %73 = vector.extract_strided_slice %64 {offsets = [1, 0], sizes = [1, 128], strides = [1, 1]} : vector<3x128xf32> to vector<1x128xf32>
    %74 = vector.extract_strided_slice %64 {offsets = [2, 0], sizes = [1, 128], strides = [1, 1]} : vector<3x128xf32> to vector<1x128xf32>
    %cst_32 = arith.constant dense<0.000000e+00> : vector<128xf32>
    %75 = vector.multi_reduction <add>, %72, %cst_32 [0] : vector<8x128xf32> to vector<128xf32>
    %76 = vector.shape_cast %75 : vector<128xf32> to vector<1x128xf32>
    %cst_33 = arith.constant 8.000000e+00 : f32
    %77 = vector.broadcast %cst_33 : f32 to vector<1x128xf32>
    %78 = arith.divf %76, %77 : vector<1x128xf32>
    %79 = vector.broadcast %78 : vector<1x128xf32> to vector<8x128xf32>
    %80 = arith.subf %72, %79 : vector<8x128xf32>
    %81 = arith.mulf %80, %80 : vector<8x128xf32>
    %cst_34 = arith.constant dense<0.000000e+00> : vector<128xf32>
    %82 = vector.multi_reduction <add>, %81, %cst_34 [0] : vector<8x128xf32> to vector<128xf32>
    %83 = vector.shape_cast %82 : vector<128xf32> to vector<1x128xf32>
    %cst_35 = arith.constant 8.000000e+00 : f32
    %84 = vector.broadcast %cst_35 : f32 to vector<1x128xf32>
    %85 = arith.divf %83, %84 : vector<1x128xf32>
    %cst_36 = arith.constant 9.99999974E-6 : f32
    %86 = vector.broadcast %cst_36 : f32 to vector<1x128xf32>
    %87 = arith.addf %85, %86 : vector<1x128xf32>
    %88 = math.rsqrt %87 : vector<1x128xf32>
    %89 = arith.mulf %73, %88 : vector<1x128xf32>
    %90 = vector.broadcast %89 : vector<1x128xf32> to vector<8x128xf32>
    %91 = arith.mulf %80, %90 : vector<8x128xf32>
    %92 = vector.broadcast %74 : vector<1x128xf32> to vector<8x128xf32>
    %93 = arith.addf %91, %92 : vector<8x128xf32>
    %c3 = arith.constant 3 : index
    %c0_37 = arith.constant 0 : index
    %c0_38 = arith.constant 0 : index
    %94 = vector.load %arg2[%c3, %c0_37, %c0_38] : memref<4x3x128xf32, #tpu.memory_space<vmem>>, vector<1x3x128xf32>
    %95 = vector.shape_cast %94 : vector<1x3x128xf32> to vector<3x128xf32>
    %96 = vector.extract_strided_slice %95 {offsets = [0, 0], sizes = [1, 128], strides = [1, 1]} : vector<3x128xf32> to vector<1x128xf32>
    %c3_39 = arith.constant 3 : index
    %c0_40 = arith.constant 0 : index
    %c0_41 = arith.constant 0 : index
    %97 = vector.load %arg1[%c3_39, %c0_40, %c0_41] : memref<4x128x128xf32, #tpu.memory_space<vmem>>, vector<1x128x128xf32>
    %98 = vector.shape_cast %97 : vector<1x128x128xf32> to vector<128x128xf32>
    %cst_42 = arith.constant dense<0.000000e+00> : vector<8x128xf32>
    %99 = tpu.matmul %93, %98, %cst_42 {dimension_numbers = #tpu.dot_dimension_numbers<[1], [0], [0], [1], [0, 0, 1, 1], [], []>} : vector<8x128xf32>, vector<128x128xf32>, vector<8x128xf32> -> vector<8x128xf32>
    %100 = vector.broadcast %96 : vector<1x128xf32> to vector<8x128xf32>
    %101 = arith.addf %99, %100 : vector<8x128xf32>
    %c0_43 = arith.constant 0 : index
    %c0_44 = arith.constant 0 : index
    %102 = vector.load %arg3[%c0_43, %c0_44] : memref<8x128xf32, #tpu.memory_space<vmem>>, vector<8x128xf32>
    tpu.vector_store %arg3[%c0_43, %c0_44], %101 {strides = array<i32>} : memref<8x128xf32, #tpu.memory_space<vmem>>, vector<8x128xf32>,
    return
  }
}

</mosaic_0001>

<bundles_post_ra>
// kernel: tpu_custom_call.1
= control target key start
LH: loop header
LB: loop body
LE: loop exit
PB: predicated region body
PF: predicated region fallthrough
CT: control target
= control target key end

     0   :  { %8 = vsyncpa [#allocation3], 0  ;;  %s441_s0 = inlined_call_operand.vmem [shape: f32[8,128], index: 0, kind: input, shape index: {}]   ;;  %s442_s1 = inlined_call_operand.hbm [shape: f32[4,128,128], index: 1, kind: input, shape index: {}]   ;;  %s443_s2 = inlined_call_operand.vmem [shape: f32[4,3,128], index: 2, kind: input, shape index: {}]   ;;  %s444_s3 = inlined_call_operand.hbm [shape: f32[8,128], index: 3, kind: output, shape index: {}]  }
   0x1   :  { %9 = vsyncpa [#allocation4], 0  ;;  %s16_s14 = sshll.u32 %s442_s1, 4  ;;  %s382_s15 = smov [#allocation2]   ;;  %s17_s14 = int_to_ptr.hbm [resolvable:$true] %s16_s14 }
   0x2   :  { %s18_s16 = sshll.u32 %s382_s15, 4  ;;  %s383_s17 = smov 128   ;;  %s19_s16 = int_to_ptr.vmem [resolvable:$true] %s18_s16 }
   0x3   :  { %s384_s18 = smov 8  }
   0x4   :  { %24 = dma.hbm_to_vmem [thread:$0]  %s17_s14, 8192, %s19_s16, [#allocation3], %s383_s17, %s383_s17, %s384_s18  }
   0x5   :  { %378 = dma.done.wait [#allocation3], 8192  }
   0x6   :  { %379 = vsyncadd [#allocation3], 4294959104  ;;  %v48_v0 = vld [vmem:[#allocation2 + $0x78] sm:$0xff]  ;;  %v47_v1 = vld [vmem:[#allocation2 + $0x70] sm:$0xff]  ;;  %v385_v23 = vmov 8.0   ;;  %s386_s27 = smov [#allocation5]  }
   0x7   :  { %50 = vmatpush.msra.mxu0 %v48_v0  ;;  %v46_v2 = vld [vmem:[#allocation2 + $0x68] sm:$0xff]  ;;  %v45_v3 = vld [vmem:[#allocation2 + $0x60] sm:$0xff]  ;;  %v44_v4 = vld [vmem:[#allocation2 + $0x58] sm:$0xff]  ;;  %322 = vrcp.f32 %v385_v23  ;;  %s302_s28 = sshll.u32 %s386_s27, 4  ;;  %s304_s4 = sshll.u32 %s444_s3, 4  ;;  %s303_s28 = int_to_ptr.vmem [resolvable:$true] %s302_s28  ;;  %s305_s4 = int_to_ptr.hbm [resolvable:$true] %s304_s4 }
   0x8   :  { %v43_v5 = vld [vmem:[#allocation2 + $0x50] sm:$0xff]  ;;  %v42_v6 = vld [vmem:[#allocation2 + $0x48] sm:$0xff]  ;;  %v41_v7 = vld [vmem:[#allocation2 + $0x40] sm:$0xff] }
   0x9   :  { %51 = vmatpush.msra.mxu0 %v47_v1  ;;  %v40_v8 = vld [vmem:[#allocation2 + $0x38] sm:$0xff]  ;;  %v39_v9 = vld [vmem:[#allocation2 + $0x30] sm:$0xff]  ;;  %v38_v10 = vld [vmem:[#allocation2 + $0x28] sm:$0xff] }
   0xa   :  { %v37_v11 = vld [vmem:[#allocation2 + $0x20] sm:$0xff]  ;;  %v36_v12 = vld [vmem:[#allocation2 + $0x18] sm:$0xff]  ;;  %v35_v13 = vld [vmem:[#allocation2 + $0x10] sm:$0xff] }
   0xb   :  { %52 = vmatpush.msra.mxu0 %v46_v2  ;;  %v34_v14 = vld [vmem:[#allocation2 + $0x8] sm:$0xff]  ;;  %v33_v15 = vld [vmem:[#allocation2] sm:$0xff]  ;;  %v128_v17 = vld [vmem:[#allocation2 + $0xf8] sm:$0xff] }
   0xc   :  { %v31_v16 = vld [vmem:[%s441_s0] sm:$0xff]  ;;  %v127_v18 = vld [vmem:[#allocation2 + $0xf0] sm:$0xff]  ;;  %130 = vmatpush.msra.mxu1 %v128_v17  ;;  %v126_v19 = vld [vmem:[#allocation2 + $0xe8] sm:$0xff] }
   0xd   :  { %53 = vmatpush.msra.mxu0 %v45_v3  ;;  %v125_v20 = vld [vmem:[#allocation2 + $0xe0] sm:$0xff]  ;;  %v124_v21 = vld [vmem:[#allocation2 + $0xd8] sm:$0xff]  ;;  %v123_v22 = vld [vmem:[#allocation2 + $0xd0] sm:$0xff]  ;;  %v323_v27 = vpop.eup %322 }
   0xe   :  { %131 = vmatpush.msra.mxu1 %v127_v18  ;;  %v122_v24 = vld [vmem:[#allocation2 + $0xc8] sm:$0xff]  ;;  %v121_v25 = vld [vmem:[#allocation2 + $0xc0] sm:$0xff]  ;;  %v120_v28 = vld [vmem:[#allocation2 + $0xb8] sm:$0xff]  ;;  %v78_v31 = vmul.f32 8.0, %v323_v27  ;;  %vm82_vm0 = vweird.f32 %v323_v27 }
   0xf   :  { %54 = vmatpush.msra.mxu0 %v44_v4  ;;  %v416_v26 = vld [vmem:[%s443_s2] sm:$0x7]  ;;  %v119_v30 = vld [vmem:[#allocation2 + $0xb0] sm:$0xff]  ;;  %v118_v32 = vld [vmem:[#allocation2 + $0xa8] sm:$0xff] }
  0x10   :  { %132 = vmatpush.msra.mxu1 %v126_v19  ;;  %v49_v29 = vperm.slane %v416_v26, 0  ;;  %v117_v35 = vld [vmem:[#allocation2 + $0xa0] sm:$0xff]  ;;  %v79_v36 = vsub.f32 1.0, %v78_v31  ;;  %v116_v38 = vld [vmem:[#allocation2 + $0x98] sm:$0xff]  ;;  %v115_v40 = vld [vmem:[#allocation2 + $0x90] sm:$0xff] }
  0x11   :  { %55 = vmatpush.msra.mxu0 %v43_v5  ;;  %v114_v43 = vld [vmem:[#allocation2 + $0x88] sm:$0xff]  ;;  %v113_v45 = vld [vmem:[#allocation2 + $0x80] sm:$0xff]  ;;  %v193_v19 = vld [vmem:[#allocation2 + $0x138] sm:$0xff] }
  0x12   :  { %133 = vmatpush.msra.mxu1 %v125_v20  ;;  %v80_v41 = vmul.f32 %v323_v27, %v79_v36  ;;  %v194_v17 = vld [vmem:[#allocation2 + $0x140] sm:$0xff]  ;;  %v187_v31 = vld [vmem:[#allocation2 + $0x108] sm:$0xff] }
  0x13   :  { %56 = vmatpush.msra.mxu0 %v42_v6  ;;  %v314_v18 = vld [vmem:[%s443_s2 + $0x4] sm:$0x7] }
  0x14   :  { %134 = vmatpush.msra.mxu1 %v124_v21  ;;  %v81_v46 = vadd.f32 %v323_v27, %v80_v41  ;;  %v129_v20 = vperm.slane %v314_v18, 0  ;;  %v192_v21 = vld [vmem:[#allocation2 + $0x130] sm:$0xff] }
  0x15   :  { %57 = vmatpush.msra.mxu0 %v41_v7  ;;  %v108_v7 = vperm.slane %v416_v26, 2 }
  0x16   :  { %135 = vmatpush.msra.mxu1 %v123_v22  ;;  %v419_v49 = vsel %vm82_vm0, %v323_v27, %v81_v46  ;;  %v191_v22 = vld [vmem:[#allocation2 + $0x128] sm:$0xff]  ;;  %v189_v27 = vld [vmem:[#allocation2 + $0x118] sm:$0xff] }
  0x17   :  { %58 = vmatpush.msra.mxu0 %v40_v8 }
  0x18   :  { %136 = vmatpush.msra.mxu1 %v122_v24 }
  0x19   :  { %59 = vmatpush.msra.mxu0 %v39_v9 }
  0x1a   :  { %137 = vmatpush.msra.mxu1 %v121_v25  ;;  %v190_v25 = vld [vmem:[#allocation2 + $0x120] sm:$0xff] }
  0x1b   :  { %60 = vmatpush.msra.mxu0 %v38_v10  ;;  %v201_v10 = vld [vmem:[#allocation2 + $0x178] sm:$0xff] }
  0x1c   :  { %138 = vmatpush.msra.mxu1 %v120_v28  ;;  %203 = vmatpush.msra.mxu2 %v201_v10 }
  0x1d   :  { %61 = vmatpush.msra.mxu0 %v37_v11  ;;  %v200_v11 = vld [vmem:[#allocation2 + $0x170] sm:$0xff] }
  0x1e   :  { %139 = vmatpush.msra.mxu1 %v119_v30  ;;  %204 = vmatpush.msra.mxu2 %v200_v11 }
  0x1f   :  { %62 = vmatpush.msra.mxu0 %v36_v12  ;;  %v199_v12 = vld [vmem:[#allocation2 + $0x168] sm:$0xff] }
  0x20   :  { %140 = vmatpush.msra.mxu1 %v118_v32  ;;  %205 = vmatpush.msra.mxu2 %v199_v12  ;;  %v263_v12 = vld [vmem:[#allocation2 + $0x1a0] sm:$0xff] }
  0x21   :  { %63 = vmatpush.msra.mxu0 %v35_v13  ;;  %v198_v13 = vld [vmem:[#allocation2 + $0x160] sm:$0xff] }
  0x22   :  { %141 = vmatpush.msra.mxu1 %v117_v35  ;;  %206 = vmatpush.msra.mxu2 %v198_v13 }
  0x23   :  { %64 = vmatpush.msra.mxu0 %v34_v14  ;;  %v197_v14 = vld [vmem:[#allocation2 + $0x158] sm:$0xff] }
  0x24   :  { %142 = vmatpush.msra.mxu1 %v116_v38  ;;  %207 = vmatpush.msra.mxu2 %v197_v14  ;;  %v262_v14 = vld [vmem:[#allocation2 + $0x198] sm:$0xff] }
  0x25   :  { %65 = vmatpush.msra.mxu0 %v33_v15  ;;  %v196_v15 = vld [vmem:[#allocation2 + $0x150] sm:$0xff] }
  0x26   :  { %66 = vmatmul.f32.vlgmr.msra.gmra.mxu0 %v31_v16  ;;  %143 = vmatpush.msra.mxu1 %v115_v40  ;;  %v195_v16 = vld [vmem:[#allocation2 + $0x148] sm:$0xff] }
  0x27   :  { %208 = vmatpush.msra.mxu2 %v196_v15 }
  0x28   :  { %144 = vmatpush.msra.mxu1 %v114_v43 }
  0x29   :  { %209 = vmatpush.msra.mxu2 %v195_v16  ;;  %v261_v16 = vld [vmem:[#allocation2 + $0x190] sm:$0xff] }
  0x2a   :  { %145 = vmatpush.msra.mxu1 %v113_v45 }
  0x2b   :  { %210 = vmatpush.msra.mxu2 %v194_v17 }
  0x2d   :  { %211 = vmatpush.msra.mxu2 %v193_v19 }
  0x2f   :  { %212 = vmatpush.msra.mxu2 %v192_v21 }
  0x31   :  { %213 = vmatpush.msra.mxu2 %v191_v22 }
  0x33   :  { %214 = vmatpush.msra.mxu2 %v190_v25 }
  0x35   :  { %215 = vmatpush.msra.mxu2 %v189_v27 }
  0xa3   :  { %v67_v33 = vpop.f32.mrf.mxu0 }
  0xa4   :  { %v68_v34 = vadd.f32 %v67_v33, %v49_v29  ;;  %v188_v29 = vld [vmem:[#allocation2 + $0x110] sm:$0xff]  ;;  %v186_v33 = vld [vmem:[#allocation2 + $0x100] sm:$0xff] }
  0xa5   :  { %216 = vmatpush.msra.mxu2 %v188_v29 }
  0xa6   :  { %v70_v37 = vmax.f32 %v68_v34, 0.0 }
  0xa7   :  { %217 = vmatpush.msra.mxu2 %v187_v31 }
  0xa8   :  { %v71_v39 = vrot.slane %v70_v37, 4 }
  0xa9   :  { %218 = vmatpush.msra.mxu2 %v186_v33 }
  0xaa   :  { %v72_v42 = vadd.f32 %v71_v39, %v70_v37 }
  0xac   :  { %v73_v44 = vrot.slane %v72_v42, 2 }
  0xae   :  { %v74_v47 = vadd.f32 %v73_v44, %v72_v42 }
  0xb0   :  { %v75_v48 = vrot.slane %v74_v47, 1 }
  0xb2   :  { %v76_v50 = vadd.f32 %v75_v48, %v74_v47 }
  0xb4   :  { %v84_v51 = vmul.f32 %v419_v49, %v76_v50 }
  0xb6   :  { %v85_v52 = vsub.f32 %v70_v37, %v84_v51 }
  0xb8   :  { %v86_v53 = vmul.f32 %v85_v52, %v85_v52 }
  0xba   :  { %v87_v54 = vrot.slane %v86_v53, 4 }
  0xbc   :  { %v88_v55 = vadd.f32 %v87_v54, %v86_v53 }
  0xbe   :  { %v89_v56 = vrot.slane %v88_v55, 2 }
  0xc0   :  { %v90_v57 = vadd.f32 %v89_v56, %v88_v55 }
  0xc2   :  { %v91_v58 = vrot.slane %v90_v57, 1 }
  0xc4   :  { %v92_v59 = vadd.f32 %v91_v58, %v90_v57  ;;  %v181_v58 = vperm.slane %v314_v18, 2 }
  0xc6   :  { %v93_v60 = vmul.f32 %v92_v59, %v419_v49 }
  0xc8   :  { %v94_v61 = vadd.f32 1e-05, %v93_v60 }
  0xca   :  { %324 = vrsqrt.f32 %v94_v61  ;;  %vm101_vm2 = vweird.f32 %v94_v61 }
  0xd0   :  { %v325_v62 = vpop.eup %324 }
  0xd1   :  { %v96_v63 = vmul.f32 %v325_v62, %v94_v61  ;;  %vm102_vm1 = vweird.f32 %v325_v62  ;;  %v274_v61 = vld [vmem:[#allocation2 + $0x1f8] sm:$0xff] }
  0xd2   :  { %vm103_vm3 = vmor %vm101_vm2, %vm102_vm1  ;;  %276 = vmatpush.msra.mxu3 %v274_v61 }
  0xd3   :  { %v97_v0 = vmul.f32 %v325_v62, %v96_v63  ;;  %v272_v63 = vld [vmem:[#allocation2 + $0x1e8] sm:$0xff] }
  0xd5   :  { %v98_v1 = vmul.f32 0.5, %v97_v0  ;;  %v271_v0 = vld [vmem:[#allocation2 + $0x1e0] sm:$0xff] }
  0xd7   :  { %v99_v2 = vsub.f32 1.5, %v98_v1  ;;  %v270_v1 = vld [vmem:[#allocation2 + $0x1d8] sm:$0xff] }
  0xd9   :  { %v100_v3 = vmul.f32 %v325_v62, %v99_v2  ;;  %v269_v2 = vld [vmem:[#allocation2 + $0x1d0] sm:$0xff] }
  0xdb   :  { %v104_v4 = vsel %vm103_vm3, %v325_v62, %v100_v3  ;;  %v273_v62 = vld [vmem:[#allocation2 + $0x1f0] sm:$0xff]  ;;  %v268_v3 = vld [vmem:[#allocation2 + $0x1c8] sm:$0xff] }
  0xdc   :  { %v105_v5 = vmul.f32 %v104_v4, %v416_v26  ;;  %277 = vmatpush.msra.mxu3 %v273_v62  ;;  %v267_v4 = vld [vmem:[#allocation2 + $0x1c0] sm:$0xff] }
  0xde   :  { %v106_v6 = vperm.slane %v105_v5, 1  ;;  %278 = vmatpush.msra.mxu3 %v272_v63  ;;  %v315_v5 = vld [vmem:[%s443_s2 + $0x8] sm:$0x7] }
  0xe0   :  { %v107_v8 = vmul.f32 %v106_v6, %v85_v52  ;;  %279 = vmatpush.msra.mxu3 %v271_v0  ;;  %v266_v6 = vld [vmem:[#allocation2 + $0x1b8] sm:$0xff] }
  0xe2   :  { %v109_v9 = vadd.f32 %v108_v7, %v107_v8  ;;  %280 = vmatpush.msra.mxu3 %v270_v1  ;;  %v202_v7 = vperm.slane %v315_v5, 0  ;;  %v265_v8 = vld [vmem:[#allocation2 + $0x1b0] sm:$0xff] }
  0xe4   :  { %146 = vmatmul.f32.vlgmr.msra.gmra.mxu1 %v109_v9  ;;  %281 = vmatpush.msra.mxu3 %v269_v2  ;;  %v264_v9 = vld [vmem:[#allocation2 + $0x1a8] sm:$0xff] }
  0xe6   :  { %282 = vmatpush.msra.mxu3 %v268_v3 }
  0xe8   :  { %283 = vmatpush.msra.mxu3 %v267_v4 }
  0xea   :  { %284 = vmatpush.msra.mxu3 %v266_v6 }
  0xec   :  { %285 = vmatpush.msra.mxu3 %v265_v8 }
  0xee   :  { %286 = vmatpush.msra.mxu3 %v264_v9 }
  0xf0   :  { %287 = vmatpush.msra.mxu3 %v263_v12 }
  0xf2   :  { %288 = vmatpush.msra.mxu3 %v262_v14 }
  0xf4   :  { %289 = vmatpush.msra.mxu3 %v261_v16 }
 0x161   :  { %v147_v23 = vpop.f32.mrf.mxu1 }
 0x162   :  { %v148_v24 = vadd.f32 %v147_v23, %v129_v20  ;;  %v259_v20 = vld [vmem:[#allocation2 + $0x180] sm:$0xff] }
 0x164   :  { %v150_v26 = vmax.f32 %v148_v24, 0.0 }
 0x166   :  { %v151_v28 = vrot.slane %v150_v26, 4 }
 0x168   :  { %v152_v30 = vadd.f32 %v151_v28, %v150_v26 }
 0x16a   :  { %v153_v32 = vrot.slane %v152_v30, 2 }
 0x16c   :  { %v154_v34 = vadd.f32 %v153_v32, %v152_v30 }
 0x16e   :  { %v155_v35 = vrot.slane %v154_v34, 1 }
 0x170   :  { %v156_v36 = vadd.f32 %v155_v35, %v154_v34 }
 0x172   :  { %v157_v37 = vmul.f32 %v156_v36, %v419_v49 }
 0x174   :  { %v158_v38 = vsub.f32 %v150_v26, %v157_v37 }
 0x176   :  { %v159_v39 = vmul.f32 %v158_v38, %v158_v38 }
 0x178   :  { %v160_v40 = vrot.slane %v159_v39, 4 }
 0x17a   :  { %v161_v41 = vadd.f32 %v160_v40, %v159_v39 }
 0x17c   :  { %v162_v42 = vrot.slane %v161_v41, 2 }
 0x17e   :  { %v163_v43 = vadd.f32 %v162_v42, %v161_v41 }
 0x180   :  { %v164_v44 = vrot.slane %v163_v43, 1 }
 0x182   :  { %v165_v45 = vadd.f32 %v164_v44, %v163_v43  ;;  %v254_v44 = vperm.slane %v315_v5, 2 }
 0x184   :  { %v166_v46 = vmul.f32 %v165_v45, %v419_v49 }
 0x186   :  { %v167_v47 = vadd.f32 1e-05, %v166_v46 }
 0x188   :  { %326 = vrsqrt.f32 %v167_v47  ;;  %vm174_vm5 = vweird.f32 %v167_v47 }
 0x18e   :  { %v327_v48 = vpop.eup %326 }
 0x18f   :  { %v169_v50 = vmul.f32 %v327_v48, %v167_v47  ;;  %vm175_vm4 = vweird.f32 %v327_v48 }
 0x190   :  { %vm176_vm6 = vmor %vm174_vm5, %vm175_vm4 }
 0x191   :  { %v170_v51 = vmul.f32 %v327_v48, %v169_v50 }
 0x193   :  { %v171_v52 = vmul.f32 0.5, %v170_v51 }
 0x195   :  { %v172_v53 = vsub.f32 1.5, %v171_v52 }
 0x197   :  { %v173_v54 = vmul.f32 %v327_v48, %v172_v53 }
 0x199   :  { %v177_v55 = vsel %vm176_vm6, %v327_v48, %v173_v54 }
 0x19a   :  { %v178_v56 = vmul.f32 %v314_v18, %v177_v55  ;;  %v260_v18 = vld [vmem:[#allocation2 + $0x188] sm:$0xff] }
 0x19b   :  { %290 = vmatpush.msra.mxu3 %v260_v18 }
 0x19c   :  { %v179_v57 = vperm.slane %v178_v56, 1 }
 0x19d   :  { %291 = vmatpush.msra.mxu3 %v259_v20 }
 0x19e   :  { %v180_v59 = vmul.f32 %v179_v57, %v158_v38 }
 0x1a0   :  { %v182_v60 = vadd.f32 %v181_v58, %v180_v59 }
 0x1a2   :  { %219 = vmatmul.f32.vlgmr.msra.gmra.mxu2 %v182_v60 }
 0x225   :  { %v220_v10 = vpop.f32.mrf.mxu2 }
 0x226   :  { %v221_v11 = vadd.f32 %v220_v10, %v202_v7 }
 0x228   :  { %v223_v13 = vmax.f32 %v221_v11, 0.0 }
 0x22a   :  { %v224_v15 = vrot.slane %v223_v13, 4 }
 0x22c   :  { %v225_v17 = vadd.f32 %v224_v15, %v223_v13 }
 0x22e   :  { %v226_v19 = vrot.slane %v225_v17, 2 }
 0x230   :  { %v227_v21 = vadd.f32 %v226_v19, %v225_v17 }
 0x232   :  { %v228_v22 = vrot.slane %v227_v21, 1 }
 0x234   :  { %v229_v23 = vadd.f32 %v228_v22, %v227_v21 }
 0x236   :  { %v230_v24 = vmul.f32 %v229_v23, %v419_v49 }
 0x238   :  { %v231_v25 = vsub.f32 %v223_v13, %v230_v24 }
 0x23a   :  { %v232_v26 = vmul.f32 %v231_v25, %v231_v25 }
 0x23c   :  { %v233_v27 = vrot.slane %v232_v26, 4 }
 0x23e   :  { %v234_v28 = vadd.f32 %v233_v27, %v232_v26 }
 0x240   :  { %v235_v29 = vrot.slane %v234_v28, 2 }
 0x242   :  { %v236_v30 = vadd.f32 %v235_v29, %v234_v28 }
 0x244   :  { %v237_v31 = vrot.slane %v236_v30, 1 }
 0x246   :  { %v238_v32 = vadd.f32 %v237_v31, %v236_v30 }
 0x248   :  { %v239_v33 = vmul.f32 %v238_v32, %v419_v49  ;;  %v316_v49 = vld [vmem:[%s443_s2 + $0xc] sm:$0x7] }
 0x249   :  { %v275_v47 = vperm.slane %v316_v49, 0 }
 0x24a   :  { %v240_v34 = vadd.f32 1e-05, %v239_v33 }
 0x24c   :  { %328 = vrsqrt.f32 %v240_v34  ;;  %vm247_vm8 = vweird.f32 %v240_v34 }
 0x252   :  { %v329_v35 = vpop.eup %328 }
 0x253   :  { %v242_v36 = vmul.f32 %v329_v35, %v240_v34  ;;  %vm248_vm7 = vweird.f32 %v329_v35 }
 0x254   :  { %vm249_vm9 = vmor %vm247_vm8, %vm248_vm7 }
 0x255   :  { %v243_v37 = vmul.f32 %v329_v35, %v242_v36 }
 0x257   :  { %v244_v38 = vmul.f32 0.5, %v243_v37 }
 0x259   :  { %v245_v39 = vsub.f32 1.5, %v244_v38 }
 0x25b   :  { %v246_v40 = vmul.f32 %v329_v35, %v245_v39 }
 0x25d   :  { %v250_v41 = vsel %vm249_vm9, %v329_v35, %v246_v40 }
 0x25e   :  { %v251_v42 = vmul.f32 %v315_v5, %v250_v41 }
 0x260   :  { %v252_v43 = vperm.slane %v251_v42, 1 }
 0x262   :  { %v253_v45 = vmul.f32 %v252_v43, %v231_v25 }
 0x264   :  { %v255_v46 = vadd.f32 %v254_v44, %v253_v45 }
 0x266   :  { %292 = vmatmul.f32.vlgmr.msra.gmra.mxu3 %v255_v46 }
 0x2e9   :  { %v293_v48 = vpop.f32.mrf.mxu3 }
 0x2ea   :  { %v294_v50 = vadd.f32 %v293_v48, %v275_v47 }
 0x2ec   :  { %296 = vst [vmem:[#allocation5] sm:$0xff] %v294_v50 }
 0x2ed   :  { %307 = dma.vmem_to_hbm [thread:$0]  %s303_s28, 128, %s305_s4, [#allocation4]  }
 0x2ee   :  { %380 = dma.done.wait [#allocation4], 128  }
 0x2ef   :  { %381 = vsyncadd [#allocation4], 4294967168 }
 0x2f0   :  { %312 = vsyncpa [#allocation3], 1 }
 0x2f1   :  { %313 = vsyncpa [#allocation4], 1 }

</bundles_post_ra>
